<compile_context>
chip_gen: v7x
topology: tpu7x:2x2x1
jax: 0.10.0
libtpu: 0.0.40
codegen_flags: <defaults>
</compile_context>

<pallas_src>
import functools

import jax
import jax.numpy as jnp
import numpy as np
from jax import lax
from jax.experimental import pallas as pl
from jax.experimental.pallas import tpu as pltpu

# Explicit scoped-VMEM limit (defaults: 16 MiB v5e / 32 MiB v6e,v7x).  48 MiB
# keeps headroom under v7x's 64 MiB physical VMEM while letting v5e/v6e run
# bigger tiles than the default.
_VMEM_LIMIT_BYTES = 48 * 1024 * 1024

# Plain Python float (NOT a jnp scalar -> would be a captured trace constant).
_NEG_INF = -10000000000.0  # same mask value as the torch module


def _round_up(x, m):
    return ((x + m - 1) // m) * m


# ----------------------------- Pallas kernels ------------------------------ #

def _proj_logits_kernel(x_ref, wp_ref, bp_ref, wa_ref, ba_ref, y_ref, l_ref):
    # x_ref: (1, ts, in_dim)  wp_ref: (in_dim, hd)  bp_ref: (1, hd)
    # wa_ref: (hd, 1)         ba_ref: (1, 1) in SMEM
    # y_ref: (1, ts, hd)      l_ref: (1, ts, 1)
    x = x_ref[0]
    y = jnp.dot(x, wp_ref[...], preferred_element_type=jnp.float32) + bp_ref[...]
    y_ref[0] = y.astype(y_ref.dtype)
    # Attention logits fused with the projection (computed once per position).
    l = jnp.dot(y, wa_ref[...], preferred_element_type=jnp.float32) + ba_ref[0, 0]
    l_ref[0] = l.astype(l_ref.dtype)


def _logits_kernel(x_ref, wa_ref, ba_ref, l_ref):
    # use_proj=False path: logits only (activations are used as-is).
    x = x_ref[0]                                              # (ts, hd)
    l = jnp.dot(x, wa_ref[...], preferred_element_type=jnp.float32) + ba_ref[0, 0]
    l_ref[0] = l.astype(l_ref.dtype)


def _span_attn_kernel(q_ref, s_ref, e_ref, logits_ref, x_ref, out_ref, *, seq):
    # q_ref/s_ref/e_ref: (1, TQ, 1) int32 span ids for this tile.
    # logits_ref: (1, bsz*seq) f32   -- precomputed, VMEM-resident (const index).
    # x_ref:      (bsz*seq, hd) f32  -- flattened activations, VMEM-resident.
    # out_ref:    (TQ, hd)           -- lane/sublane-dense output slab.
    q = q_ref[0]                       # (TQ, 1)
    s = s_ref[0]
    e = e_ref[0]
    tq = q.shape[0]
    bs = x_ref.shape[0]

    # Column c of the flattened axis corresponds to (batch c//seq, pos c%seq).
    col = lax.broadcasted_iota(jnp.int32, (tq, bs), 1)
    col_b = col // seq
    col_s = col - col_b * seq
    mask = (col_b == q) & (col_s >= s) & (col_s <= e)          # (TQ, bs)

    lg = logits_ref[...]                                       # (1, bs)
    masked = jnp.where(mask, lg, _NEG_INF)                     # (TQ, bs)

    # Masked softmax over the flattened (batch, seq) axis; only the queried
    # batch's in-span positions are unmasked, so this equals a per-batch
    # softmax over the span.
    m = jnp.max(masked, axis=-1, keepdims=True)
    p = jnp.exp(masked - m)
    denom = jnp.sum(p, axis=-1, keepdims=True)                 # (TQ, 1)

    # Weighted sum as one MXU matmul; normalize on the (TQ, hd) result
    # (cheaper than normalizing the (TQ, bs) weights).
    acc = jnp.dot(p, x_ref[...], preferred_element_type=jnp.float32)
    inv = pl.reciprocal(denom)   # exact; approx=True possible if bit-exactness not needed
    out = acc * inv

    # Spans with end < start were never written in the reference -> zeros.
    out = jnp.where(e >= s, out, 0.0)
    out_ref[...] = out.astype(out_ref.dtype)


# ------------------------------ JAX wrappers ------------------------------- #

def pallas_proj_and_logits(x, proj_w, proj_b, attn_w, attn_b):
    """x: (bsz, seq, in_dim) -> (y: (bsz, seq, hd), logits: (bsz, seq, 1))."""
    bsz, seq, in_dim = x.shape
    hd = proj_w.shape[1]
    ts = seq if seq <= 512 else 512        # seq tile (VMEM-friendly on v7x)
    n_s = pl.cdiv(seq, ts)

    y, logits = pl.pallas_call(
        _proj_logits_kernel,
        out_shape=(jax.ShapeDtypeStruct((bsz, seq, hd), jnp.float32),
                   jax.ShapeDtypeStruct((bsz, seq, 1), jnp.float32)),
        grid_spec=pltpu.PrefetchScalarGridSpec(
            num_scalar_prefetch=0,
            grid=(bsz, n_s),
            in_specs=[
                pl.BlockSpec((1, ts, in_dim), lambda b, t: (b, t, 0)),
                pl.BlockSpec((in_dim, hd), lambda b, t: (0, 0)),
                pl.BlockSpec((1, hd), lambda b, t: (0, 0)),
                pl.BlockSpec((hd, 1), lambda b, t: (0, 0)),
                pl.BlockSpec(memory_space=pltpu.MemorySpace.SMEM),
            ],
            out_specs=(pl.BlockSpec((1, ts, hd), lambda b, t: (b, t, 0)),
                       pl.BlockSpec((1, ts, 1), lambda b, t: (b, t, 0))),
        ),
        compiler_params=pltpu.CompilerParams(
            dimension_semantics=("parallel", "parallel"),
            vmem_limit_bytes=_VMEM_LIMIT_BYTES),
    )(x, proj_w, proj_b.reshape(1, hd), attn_w.reshape(hd, 1),
      attn_b.reshape(1, 1).astype(jnp.float32))
    return y, logits


def pallas_attn_logits(x, attn_w, attn_b):
    """use_proj=False path: x: (bsz, seq, hd) -> logits (bsz, seq, 1)."""
    bsz, seq, hd = x.shape
    ts = seq if seq <= 512 else 512
    n_s = pl.cdiv(seq, ts)
    return pl.pallas_call(
        _logits_kernel,
        out_shape=jax.ShapeDtypeStruct((bsz, seq, 1), jnp.float32),
        grid_spec=pltpu.PrefetchScalarGridSpec(
            num_scalar_prefetch=0,
            grid=(bsz, n_s),
            in_specs=[
                pl.BlockSpec((1, ts, hd), lambda b, t: (b, t, 0)),
                pl.BlockSpec((hd, 1), lambda b, t: (0, 0)),
                pl.BlockSpec(memory_space=pltpu.MemorySpace.SMEM),
            ],
            out_specs=pl.BlockSpec((1, ts, 1), lambda b, t: (b, t, 0)),
        ),
        compiler_params=pltpu.CompilerParams(
            dimension_semantics=("parallel", "parallel"),
            vmem_limit_bytes=_VMEM_LIMIT_BYTES),
    )(x, attn_w.reshape(hd, 1), attn_b.reshape(1, 1).astype(jnp.float32))


def pallas_span_attention(y, logits, query_batch_idx, start_ids, end_ids, *, tq=128):
    """y: (bsz, seq, hd), logits: (bsz, seq, 1); span ids: (N,). Returns (N, hd)."""
    bsz, seq, hd = y.shape
    n = query_batch_idx.shape[0]
    bs = bsz * seq

    # Flattened activations/logits: constant-index blocks -> DMA'd once, then
    # resident in VMEM across all span tiles.
    # TODO(synk): for very large bsz*seq*hd (beyond VMEM, esp. v7x 64 MiB) tile
    # the flattened axis with an online-softmax running max/denominator.
    x_flat = y.reshape(bs, hd).astype(jnp.float32)
    lg_flat = logits.reshape(1, bs).astype(jnp.float32)

    tq = min(tq, _round_up(max(n, 1), 8))
    n_pad = _round_up(n, tq)
    n_tiles = n_pad // tq

    def _prep(v, fill):
        v = v.astype(jnp.int32)
        v = jnp.pad(v, (0, n_pad - n), constant_values=fill)
        return v.reshape(n_tiles, tq, 1)

    q_arr = _prep(query_batch_idx, 0)
    s_arr = _prep(start_ids, 1)
    e_arr = _prep(end_ids, 0)        # padded spans: end < start -> zeros

    kernel = functools.partial(_span_attn_kernel, seq=seq)
    out = pl.pallas_call(
        kernel,
        out_shape=jax.ShapeDtypeStruct((n_pad, hd), jnp.float32),
        grid_spec=pltpu.PrefetchScalarGridSpec(
            num_scalar_prefetch=0,
            grid=(n_tiles,),
            in_specs=[
                pl.BlockSpec((1, tq, 1), lambda t: (t, 0, 0)),   # batch idx
                pl.BlockSpec((1, tq, 1), lambda t: (t, 0, 0)),   # start
                pl.BlockSpec((1, tq, 1), lambda t: (t, 0, 0)),   # end
                pl.BlockSpec((1, bs), lambda t: (0, 0)),         # logits (resident)
                pl.BlockSpec((bs, hd), lambda t: (0, 0)),        # x (resident)
            ],
            out_specs=pl.BlockSpec((tq, hd), lambda t: (t, 0)),
        ),
        compiler_params=pltpu.CompilerParams(
            dimension_semantics=("parallel",),
            vmem_limit_bytes=_VMEM_LIMIT_BYTES),
    )(q_arr, s_arr, e_arr, lg_flat, x_flat)
    return out[:n]


def attn_span_repr_forward(params, encoded_input, start_ids_1, end_ids_1,
                           query_batch_idx, start_ids_2, end_ids_2, use_proj):
    """Matches AttnSpanRepr.forward: returns (res1, res2) or (res1, None)."""
    x = encoded_input.astype(jnp.float32)
    if use_proj:
        y, logits = pallas_proj_and_logits(
            x, params["proj_w"], params["proj_b"],
            params["attn_w"], params["attn_b"])
    else:
        y = x
        logits = pallas_attn_logits(x, params["attn_w"], params["attn_b"])

    if start_ids_2 is None:
        res1 = pallas_span_attention(y, logits, query_batch_idx,
                                     start_ids_1, end_ids_1)
        return res1, None

    # Fuse both span sets into one pallas_call (one pass over resident x).
    n = query_batch_idx.shape[0]
    qq = jnp.concatenate([query_batch_idx, query_batch_idx])
    ss = jnp.concatenate([start_ids_1, start_ids_2])
    ee = jnp.concatenate([end_ids_1, end_ids_2])
    res = pallas_span_attention(y, logits, qq, ss, ee)
    return res[:n], res[n:]


# --------------------------- pure-JAX reference ----------------------------- #

def _ref_span_attention(x, qidx, s, e, attn_w, attn_b):
    xb = x[qidx]                                               # (N, seq, hd)
    logits = jnp.einsum("nsh,h->ns", xb, attn_w) + attn_b[0]   # (N, seq)
    seq = x.shape[1]
    pos = jnp.arange(seq)[None, :]
    mask = (pos >= s[:, None]) & (pos <= e[:, None])
    logits = logits + jnp.where(mask, 0.0, -10000000000.0)
    wts = jax.nn.softmax(logits, axis=1)
    out = jnp.einsum("ns,nsh->nh", wts, xb)
    return jnp.where((e >= s)[:, None], out, 0.0)


def _ref_forward(params, x, s1, e1, qidx, s2, e2, use_proj):
    if use_proj:
        x = x @ params["proj_w"] + params["proj_b"]
    r1 = _ref_span_attention(x, qidx, s1, e1, params["attn_w"], params["attn_b"])
    r2 = _ref_span_attention(x, qidx, s2, e2, params["attn_w"], params["attn_b"])
    return r1, r2


# ---------------------------------- main ------------------------------------ #

if __name__ == "__main__":
    bsz, seq, input_dim, proj_dim = 2, 8, 32, 16

    key = jax.random.PRNGKey(0)
    k_x, k_pw, k_pb, k_aw, k_ab, k_aw2, k_ab2 = jax.random.split(key, 7)

    encoded_input = jax.random.normal(k_x, (bsz, seq, input_dim), jnp.float32)

    # Synthetic parameters (shapes follow nn.Linear in __init__);
    # proj_w stored already transposed as (in, out).
    params_proj = {
        "proj_w": 0.1 * jax.random.normal(k_pw, (input_dim, proj_dim), jnp.float32),
        "proj_b": 0.1 * jax.random.normal(k_pb, (proj_dim,), jnp.float32),
        "attn_w": 0.1 * jax.random.normal(k_aw, (proj_dim,), jnp.float32),
        "attn_b": 0.1 * jax.random.normal(k_ab, (1,), jnp.float32),
    }
    params_noproj = {
        "attn_w": 0.1 * jax.random.normal(k_aw2, (input_dim,), jnp.float32),
        "attn_b": 0.1 * jax.random.normal(k_ab2, (1,), jnp.float32),
    }

    # Span queries (flat, as in the torch forward's gather at the end).
    query_batch_idx = jnp.array([0, 0, 1, 1, 0, 1], dtype=jnp.int32)
    start_ids_1 = jnp.array([0, 2, 1, 3, 5, 0], dtype=jnp.int32)
    end_ids_1 = jnp.array([3, 2, 4, 7, 7, 7], dtype=jnp.int32)
    start_ids_2 = jnp.array([1, 0, 2, 5, 6, 1], dtype=jnp.int32)
    end_ids_2 = jnp.array([2, 5, 6, 3, 7, 3], dtype=jnp.int32)  # one end<start -> zeros

    # --- use_proj=True path (fused projection + logits kernel) ---
    res1, res2 = attn_span_repr_forward(
        params_proj, encoded_input, start_ids_1, end_ids_1,
        query_batch_idx, start_ids_2, end_ids_2, use_proj=True)
    res1 = jax.block_until_ready(res1)
    res2 = jax.block_until_ready(res2)

    ref1, ref2 = _ref_forward(
        params_proj, encoded_input, start_ids_1, end_ids_1,
        query_batch_idx, start_ids_2, end_ids_2, use_proj=True)
    np.testing.assert_allclose(np.asarray(res1), np.asarray(ref1), atol=1e-5, rtol=1e-5)
    np.testing.assert_allclose(np.asarray(res2), np.asarray(ref2), atol=1e-5, rtol=1e-5)

    # --- use_proj=False path (logits-only kernel) ---
    nres1, nres2 = attn_span_repr_forward(
        params_noproj, encoded_input, start_ids_1, end_ids_1,
        query_batch_idx, start_ids_2, end_ids_2, use_proj=False)
    nres1 = jax.block_until_ready(nres1)
    nres2 = jax.block_until_ready(nres2)

    nref1, nref2 = _ref_forward(
        params_noproj, encoded_input, start_ids_1, end_ids_1,
        query_batch_idx, start_ids_2, end_ids_2, use_proj=False)
    np.testing.assert_allclose(np.asarray(nres1), np.asarray(nref1), atol=1e-5, rtol=1e-5)
    np.testing.assert_allclose(np.asarray(nres2), np.asarray(nref2), atol=1e-5, rtol=1e-5)

    print("KERNEL_OK")
</pallas_src>

<mosaic_0001>
module attributes {stable_mosaic.version = 11 : i64} {
  func.func @_proj_logits_kernel(%arg0: i32, %arg1: i32, %arg2: memref<1x8x32xf32, #tpu.memory_space<vmem>>, %arg3: memref<32x16xf32, #tpu.memory_space<vmem>>, %arg4: memref<1x16xf32, #tpu.memory_space<vmem>>, %arg5: memref<16x1xf32, #tpu.memory_space<vmem>>, %arg6: memref<1x1xf32, #tpu.memory_space<smem>>, %arg7: memref<1x8x16xf32, #tpu.memory_space<vmem>>, %arg8: memref<1x8x1xf32, #tpu.memory_space<vmem>>) attributes {dimension_semantics = [#tpu.dimension_semantics<parallel>, #tpu.dimension_semantics<parallel>], iteration_bounds = array<i64: 2, 1>, scalar_prefetch = 0 : i64, scratch_operands = 0 : i64, tpu.core_type = #tpu.core_type<tc>, window_params = [{transform_indices = @transform_0, window_bounds = array<i64: 1, 8, 32>}, {pipeline_mode = #tpu.pipeline_mode<synchronous>, transform_indices = @transform_1, window_bounds = array<i64: 32, 16>}, {pipeline_mode = #tpu.pipeline_mode<synchronous>, transform_indices = @transform_2, window_bounds = array<i64: 1, 16>}, {pipeline_mode = #tpu.pipeline_mode<synchronous>, transform_indices = @transform_3, window_bounds = array<i64: 16, 1>}, {transform_indices = @transform_4, window_bounds = array<i64: 1, 1>}, {transform_indices = @transform_5, window_bounds = array<i64: 1, 8, 16>}, {transform_indices = @transform_6, window_bounds = array<i64: 1, 8, 1>}]} {
    %c0 = arith.constant 0 : index
    %c0_0 = arith.constant 0 : index
    %c0_1 = arith.constant 0 : index
    %0 = vector.load %arg2[%c0, %c0_0, %c0_1] : memref<1x8x32xf32, #tpu.memory_space<vmem>>, vector<1x8x32xf32>
    %1 = vector.shape_cast %0 : vector<1x8x32xf32> to vector<8x32xf32>
    %c0_2 = arith.constant 0 : index
    %c0_3 = arith.constant 0 : index
    %2 = vector.load %arg3[%c0_2, %c0_3] : memref<32x16xf32, #tpu.memory_space<vmem>>, vector<32x16xf32>
    %cst = arith.constant dense<0.000000e+00> : vector<8x16xf32>
    %3 = tpu.matmul %1, %2, %cst {dimension_numbers = #tpu.dot_dimension_numbers<[1], [0], [0], [1], [0, 0, 1, 1], [], []>} : vector<8x32xf32>, vector<32x16xf32>, vector<8x16xf32> -> vector<8x16xf32>
    %c0_4 = arith.constant 0 : index
    %c0_5 = arith.constant 0 : index
    %4 = vector.load %arg4[%c0_4, %c0_5] : memref<1x16xf32, #tpu.memory_space<vmem>>, vector<1x16xf32>
    %5 = vector.broadcast %4 : vector<1x16xf32> to vector<8x16xf32>
    %6 = arith.addf %3, %5 : vector<8x16xf32>
    %c0_6 = arith.constant 0 : index
    %c0_7 = arith.constant 0 : index
    %c0_8 = arith.constant 0 : index
    %7 = vector.load %arg7[%c0_6, %c0_7, %c0_8] : memref<1x8x16xf32, #tpu.memory_space<vmem>>, vector<1x8x16xf32>
    %8 = vector.shape_cast %7 : vector<1x8x16xf32> to vector<8x16xf32>
    %9 = vector.shape_cast %6 : vector<8x16xf32> to vector<1x8x16xf32>
    tpu.vector_store %arg7[%c0_6, %c0_7, %c0_8], %9 {strides = array<i32>} : memref<1x8x16xf32, #tpu.memory_space<vmem>>, vector<1x8x16xf32>,
    %c0_9 = arith.constant 0 : index
    %c0_10 = arith.constant 0 : index
    %10 = vector.load %arg5[%c0_9, %c0_10] : memref<16x1xf32, #tpu.memory_space<vmem>>, vector<16x1xf32>
    %cst_11 = arith.constant dense<0.000000e+00> : vector<8x1xf32>
    %11 = tpu.matmul %6, %10, %cst_11 {dimension_numbers = #tpu.dot_dimension_numbers<[1], [0], [0], [1], [0, 0, 1, 1], [], []>} : vector<8x16xf32>, vector<16x1xf32>, vector<8x1xf32> -> vector<8x1xf32>
    %c0_12 = arith.constant 0 : index
    %c0_13 = arith.constant 0 : index
    %12 = memref.load %arg6[%c0_12, %c0_13] : memref<1x1xf32, #tpu.memory_space<smem>>
    %13 = vector.broadcast %12 : f32 to vector<8x1xf32>
    %14 = arith.addf %11, %13 : vector<8x1xf32>
    %c0_14 = arith.constant 0 : index
    %c0_15 = arith.constant 0 : index
    %c0_16 = arith.constant 0 : index
    %15 = vector.load %arg8[%c0_14, %c0_15, %c0_16] : memref<1x8x1xf32, #tpu.memory_space<vmem>>, vector<1x8x1xf32>
    %16 = vector.shape_cast %15 : vector<1x8x1xf32> to vector<8x1xf32>
    %17 = vector.shape_cast %14 : vector<8x1xf32> to vector<1x8x1xf32>
    tpu.vector_store %arg8[%c0_14, %c0_15, %c0_16], %17 {strides = array<i32>} : memref<1x8x1xf32, #tpu.memory_space<vmem>>, vector<1x8x1xf32>,
    return
  }
  func.func @transform_0(%arg0: i32, %arg1: i32) -> (i32, i32, i32) {
    %c0_i32 = arith.constant 0 : i32
    %c0_i32_0 = arith.constant 0 : i32
    return %arg0, %arg1, %c0_i32 : i32, i32, i32
  }
  func.func @transform_1(%arg0: i32, %arg1: i32) -> (i32, i32) {
    %c0_i32 = arith.constant 0 : i32
    %c0_i32_0 = arith.constant 0 : i32
    %c0_i32_1 = arith.constant 0 : i32
    return %c0_i32, %c0_i32_0 : i32, i32
  }
  func.func @transform_2(%arg0: i32, %arg1: i32) -> (i32, i32) {
    %c0_i32 = arith.constant 0 : i32
    %c0_i32_0 = arith.constant 0 : i32
    %c0_i32_1 = arith.constant 0 : i32
    return %c0_i32, %c0_i32_0 : i32, i32
  }
  func.func @transform_3(%arg0: i32, %arg1: i32) -> (i32, i32) {
    %c0_i32 = arith.constant 0 : i32
    %c0_i32_0 = arith.constant 0 : i32
    %c0_i32_1 = arith.constant 0 : i32
    return %c0_i32, %c0_i32_0 : i32, i32
  }
  func.func @transform_4(%arg0: i32, %arg1: i32) -> (i32, i32) {
    %c0_i32 = arith.constant 0 : i32
    %c0_i32_0 = arith.constant 0 : i32
    %c0_i32_1 = arith.constant 0 : i32
    return %c0_i32, %c0_i32_0 : i32, i32
  }
  func.func @transform_5(%arg0: i32, %arg1: i32) -> (i32, i32, i32) {
    %c0_i32 = arith.constant 0 : i32
    %c0_i32_0 = arith.constant 0 : i32
    return %arg0, %arg1, %c0_i32 : i32, i32, i32
  }
  func.func @transform_6(%arg0: i32, %arg1: i32) -> (i32, i32, i32) {
    %c0_i32 = arith.constant 0 : i32
    %c0_i32_0 = arith.constant 0 : i32
    return %arg0, %arg1, %c0_i32 : i32, i32, i32
  }
}

</mosaic_0001>

<bundles_post_ra>
// kernel: tpu_custom_call.1
= control target key start
LH: loop header
LB: loop body
LE: loop exit
PB: predicated region body
PF: predicated region fallthrough
CT: control target
= control target key end

     0   :  { %s953_s0 = inlined_call_operand.vmem [shape: f32[2,8,32], index: 0, kind: input, shape index: {}]   ;;  %s954_s1 = inlined_call_operand.vmem [shape: f32[32,16], index: 1, kind: input, shape index: {}]   ;;  %s955_s2 = inlined_call_operand.vmem [shape: f32[1,16], index: 2, kind: input, shape index: {}]   ;;  %s956_s3 = inlined_call_operand.vmem [shape: f32[16,1], index: 3, kind: input, shape index: {}]   ;;  %s957_s4 = inlined_call_operand.<no memory space> [shape: f32[1,1], index: 4, kind: input, shape index: {}]   ;;  %s958_s5 = inlined_call_operand.hbm [shape: f32[2,8,16], index: 5, kind: output, shape index: {0}]   ;;  %s959_s6 = inlined_call_operand.vmem [shape: f32[2,8,1], index: 6, kind: output, shape index: {1}]  }
   0x1   :  { %12 = sst [smem:[#allocation2]] %s957_s4 }
   0x2   :  { %13 = vsyncpa [#allocation4], 0 }
   0x3   :  { %15 = vsyncpa [#allocation4 + $0x1], 0  ;;  %s816_s23 = smov 0   ;;  %s818_s24 = smov 0  }
   0x4   :  { %s820_s25 = smov 0   ;;  %s822_s26 = smov 0  }
   0x5   :  { %s824_s27 = smov 0   ;;  %s826_s28 = smov 0  }
   0x6 LB: > { %s586_s4 = sadd.s32 4294967295, %s772_s28   ;;  %s587_s29 = sadd.s32 4294967294, %s772_s28   ;;  %s772_s28 = sphi %s826_s28, %s21_s28   ;;  %s768_s27 = sphi %s824_s27, %s966_s27   ;;  %s764_s26 = sphi %s822_s26, %s965_s26   ;;  %s760_s25 = sphi %s820_s25, %s964_s25   ;;  %s756_s24 = sphi %s818_s24, %s963_s24   ;;  %s752_s23 = sphi %s816_s23, %s962_s23  }
   0x7   : > { %s33_s30 = sadd.s32 1, %s768_s27  ;;  %s154_s7 = sadd.s32 1, %s760_s25 }
   0x8   : > { %p35_p0 = scmp.ge.s32.totalorder %s33_s30, 2  ;;  %p164_p1 = scmp.ne.s32.totalorder %s760_s25, %s756_s24 }
   0x9   : > { %p165_p2 = scmp.eq.s32.totalorder %s586_s4, 1  ;;  %p170_p3 = scmp.ne.s32.totalorder %s756_s24, %s752_s23 }
   0xa   : > { %s968_s30 = smov (%p35_p0, %s33_s30), 0  ;;  %p171_p5 = scmp.eq.s32.totalorder %s587_s29, 1 }
   0xb   : > { %p856_p4 = por %p165_p2, %p164_p1  ;;  %s149_s9 = ssub.s32 %s768_s27, %s968_s30 }
   0xc   : > { %p590_p6 = scmp.ge.s32.totalorder %s772_s28, 1  ;;  %p152_p7 = scmp.eq.s32.totalorder %s149_s9, 0 }
   0xd   : > { %p863_p8 = por %p171_p5, %p170_p3  ;;  %p239_p9 = scmp.lt.s32.totalorder %s772_s28, 3 }
   0xe   : > { %s869_s11 = scalar_select %p152_p7, %s760_s25, %s154_s7  }
   0xf   : > { %p240_p10 = pnand %p590_p6, %p239_p9 }
  0x10   : > { %v293_v0 = vld [vmem:[%s954_s1] sm:$0xff] (!%p240_p10)  ;;  %v294_v1 = vld [vmem:[%s954_s1 + $0x8] sm:$0xff] (!%p240_p10)  ;;  %v295_v2 = vld [vmem:[%s954_s1 + $0x10] sm:$0xff] (!%p240_p10)  ;;  %v774_v3 = vmov (!%p240_p10), 0.0|0.0   ;;  %vm775_vm0 = vmmov (!%p240_p10), 0   ;;  %v776_v6 = vmov (!%p240_p10), 0.0  }
  0x11   : > { %243 = sbr.rel (%p240_p10) target bundleno = 458 (0x1ca), region = 40  ;;  %627 = vmatprep.subr.bf16.mxu0 (!%p240_p10), %v774_v3  ;;  %v628_v4 = vpack.c.bf16 (!%p240_p10), %v294_v1, %v293_v0  ;;  %v296_v5 = vld [vmem:[%s954_s1 + $0x18] sm:$0xff] (!%p240_p10)  ;;  %617 = vmatprep.mubr.msk.f32.mxu0 (!%p240_p10), %vm775_vm0, %v776_v6  ;;  %p278_p11 = scmp.lt.s32.totalorder (!%p240_p10), %s764_s26, 1  ;;  %vm304_vm1 = vcmask (!%p240_p10), 261120   ;;  %v380_v9 = vld [vmem:[%s956_s3] sm:$0xff] (!%p240_p10)  ;;  %v381_v10 = vld [vmem:[%s956_s3 + $0x8] sm:$0xff] (!%p240_p10) }
  0x12   : > { %633 = vmatprep.subr.bf16.mxu1 (!%p240_p10), %v774_v3  ;;  %624 = vmatprep.mubr.msk.f32.mxu1 (!%p240_p10), %vm775_vm0, %v776_v6  ;;  %v631_v7 = vpack.c.bf16 (!%p240_p10), %v296_v5, %v295_v2  ;;  %v634_v11 = vpack.c.bf16 (!%p240_p10), %v381_v10, %v380_v9  ;;  %s266_s14 = sand.u32 (!%p240_p10), 1, %s756_s24   ;;  %v594_v12 = vld [vmem:[%s955_s2] ss:$0 sm:$0xff] (!%p240_p10)  ;;  %vm378_vm2 = vcmask (!%p240_p10), 130048   ;;  %s598_s19 = sshll.u32 (!%p240_p10), %s764_s26, 7 }
  0x13   : > { %629 = vmatpush3.bf16.msra.mxu0 (!%p240_p10), %v628_v4  ;;  %s591_s15 = sshll.u32 (!%p240_p10), %s266_s14, 3  ;;  %s907_s7 = scalar_lea.hbm (!%p240_p10), %s958_s5, %s598_s19 }
  0x14   : > { %630 = vmatprep.subr.bf16.mxu0 (!%p240_p10), %v774_v3  ;;  %635 = vmatpush3.bf16.msra.mxu1 (!%p240_p10), %v634_v11  ;;  %s268_s18 = scalar_lea.vmem (!%p240_p10), [#allocation3], %s591_s15  ;;  %s460_s9 = scalar_lea.sflag (!%p240_p10), [#allocation4], %s266_s14 }
  0x15   : > { %s481_s22 = sshll.u32 (!%p240_p10), %s268_s18, 4  ;;  %s777_s13 = smov (!%p240_p10), [#allocation3]   ;;  %s482_s22 = int_to_ptr.vmem [resolvable:$true] %s481_s22 }
  0x16   : > { %s694_s12 = scalar_lea.vmem (!%p240_p10), %s482_s22, 128  ;;  %s698_s16 = sshll.u32 (!%p240_p10), %s777_s13, 4  ;;  %s699_s16 = int_to_ptr.vmem [resolvable:$false] %s698_s16 }
  0x17   : > { %632 = vmatpush3.bf16.msra.mxu0 (!%p240_p10), %v631_v7  ;;  %p695_p12 = scmp.ne.s32.totalorder (!%p240_p10), %s482_s22, %s694_s12  ;;  %s700_s17 = scalar_lea.vmem (!%p240_p10), %s699_s16, 256 }
  0x18   : > { %s885_s20 = scalar_select %p278_p11, %s764_s26, 1 }
  0x19   : > { %p696_p13 = pnand %p695_p12, %p856_p4  ;;  %p701_p1 = scmp.lt.s32.totalorder %s482_s22, %s699_s16 }
  0x1a   : > { %s592_s21 = sshll.u32 %s885_s20, 3  ;;  %p702_p2 = scmp.lt.s32.totalorder %s700_s17, %s694_s12 }
  0x1b   : > { %s284_s29 = scalar_lea.vmem %s953_s0, %s592_s21  ;;  %p697_p0 = pneg %p696_p13 }
  0x1c   : > { %v292_v8 = vld [vmem:[%s284_s29] sm:$0xff]  ;;  %p703_p3 = por %p702_p2, %p701_p1 }
  0x1d   : > { %618 = vmatmul.mubr.msk.f32.vlgmr.msra.gmra.mrb[0].mxu0 %vm304_vm1, %v292_v8 }
  0x1e   : > { %p704_p5 = pnand %p703_p3, %p697_p0 }
  0xf0   : > { %v374_v13 = vpop.f32.mrb[0].mxu0 }
  0xf1   : > { %v375_v14 = vadd.f32 %v594_v12, %v374_v13  ;;  %v619_v15 = vpop.f32.mrb[1].mxu0 }
  0xf3   : > { %625 = vmatmul.mubr.msk.f32.vlgmr.msra.gmra.mrb[0].mxu1 %vm378_vm2, %v375_v14  ;;  %379 = vst.msk [vmem:[%s268_s18] sm:$0xff] %vm378_vm2, %v375_v14 }
  0xf4   : > { %707 = shalt.err (!%p704_p5)
}
  0xf5   : > { %s708_s26 = scalar_lea.hbm %s907_s7, 128  ;;  %s712_s18 = scalar_lea.hbm %s958_s5, 256 }
  0xf6   : > { %p709_p6 = scmp.ne.s32.totalorder %s907_s7, %s708_s26  ;;  %p713_p10 = scmp.lt.u32.totalorder %s907_s7, %s958_s5 }
  0xf7   : > { %p714_p11 = scmp.lt.u32.totalorder %s712_s18, %s708_s26  ;;  %p716_p13 = scmp.lt.u32.totalorder %s708_s26, %s907_s7 }
  0xf8   : > { %p710_p7 = pnand %p709_p6, %p856_p4 }
  0xf9   : > { %p715_p12 = por %p714_p11, %p713_p10 }
  0xfa   : > { %p711_p9 = pneg %p710_p7 }
  0xfb   : > { %p717_p0 = por %p716_p13, %p715_p12 }
  0xfd   : > { %p718_p1 = pnand %p717_p0, %p711_p9 }
  0xff   : > { %721 = shalt.err (!%p718_p1)
}
 0x100   : > { %636 = dma.vmem_to_hbm [thread:$0]  (%p856_p4), %s482_s22, 128, %s907_s7, %s460_s9   ;;  %vm457_vm3 = vcmask 7168  }
 0x101   : > { %s382_s29 = sld [smem:[#allocation2]]  ;;  %s291_s16 = scalar_lea.vmem %s959_s6, %s592_s21 }
 0x107   : > { %v383_v16 = vstv %s382_s29 }
 0x1c6   : > { %v453_v17 = vpop.f32.mrb[0].mxu1 }
 0x1c7   : > { %v454_v18 = vadd.f32 %v453_v17, %v383_v16  ;;  %v626_v19 = vpop.f32.mrb[1].mxu1 }
 0x1c9   : > { %458 = vst.msk [vmem:[%s291_s16] sm:$0xff] %vm457_vm3, %v454_v18 }
 0x1ca PF: > { %p642_p2 = scmp.ge.s32.totalorder %s772_s28, 2  ;;  %s496_s8 = sand.u32 1, %s752_s23  }
 0x1cb   : > { %s497_s22 = scalar_lea.sflag [#allocation4], %s496_s8 }
 0x1cc   : > { %p639_p4 = pnand %p642_p2, %p863_p8 }
 0x1ce   : > { %747 = dma.done.wait (!%p639_p4), %s497_s22, 128  }
 0x1cf   : > { %749 = vsyncadd (!%p639_p4), %s497_s22, 4294967168  ;;  %s21_s28 = sadd.s32 1, %s772_s28   ;;  %s962_s23 = smov %s756_s24 }
 0x1d0   : > { %p18_p3 = scmp.ge.s32.totalorder %s21_s28, 4   ;;  %s963_s24 = smov %s760_s25 }
 0x1d1   : > { %s964_s25 = smov %s869_s11  ;;  %s965_s26 = smov %s768_s27 }
 0x1d2   : > { %s966_s27 = smov %s968_s30  ;;  %20 = sbr.rel (!%p18_p3) target bundleno = 6 (0x6), region = 87 }
 0x1d9   :  { %512 = vsyncpa [#allocation4], 1 }
 0x1da   :  { %514 = vsyncpa [#allocation4 + $0x1], 1 }

</bundles_post_ra>
